<compile_context>
chip_gen: v6e
topology: v6e:2x2x1
jax: 0.10.0
libtpu: 0.0.40
codegen_flags: <defaults>
</compile_context>

<pallas_src>
import math
from functools import partial

import jax
import jax.numpy as jnp
from jax.experimental import pallas as pl
from jax.experimental.pallas import tpu as pltpu

D_MODEL = 64
MAX_LEN = 5000
DROPOUT_P = 0.1


def make_pe_table(d_model: int = D_MODEL, max_len: int = MAX_LEN) -> jnp.ndarray:
    """Deterministic sinusoidal table, identical to the PyTorch __init__ (2D)."""
    position = jnp.arange(0, max_len, dtype=jnp.float32)[:, None]            # [L, 1]
    div_term = jnp.exp(jnp.arange(0, d_model, 2, dtype=jnp.float32)
                       * (-math.log(10000.0) / d_model))                     # [D/2]
    pe = jnp.zeros((max_len, d_model), dtype=jnp.float32)
    pe = pe.at[:, 0::2].set(jnp.sin(position * div_term))
    pe = pe.at[:, 1::2].set(jnp.cos(position * div_term))
    return pe                                                                 # [L, D]


# ---------------------------------------------------------------------------
# Kernels (operate on the lane-dense [S, B*D] view)
# ---------------------------------------------------------------------------
def _pe_add_kernel(x_ref, pe_ref, o_ref, *, batch):
    # x_ref: (ts, B*D), pe_ref: (ts, D) -> broadcast pe over the batch blocks.
    pe = jnp.tile(pe_ref[...], (1, batch))                  # (ts, B*D)
    y = x_ref[...].astype(jnp.float32) + pe
    o_ref[...] = y.astype(o_ref.dtype)


def _pe_add_dropout_kernel(x_ref, pe_ref, noise_ref, o_ref, *,
                           batch, threshold, scale):
    # noise_ref: (ts, B*D) int32, uniform over the full int32 range.
    # P(noise >= threshold) == 1 - p  (inverted dropout keep probability).
    pe = jnp.tile(pe_ref[...], (1, batch))
    y = x_ref[...].astype(jnp.float32) + pe
    keep = noise_ref[...] >= jnp.int32(threshold)
    o_ref[...] = jnp.where(keep, y * jnp.float32(scale),
                           jnp.zeros_like(y)).astype(o_ref.dtype)


# ---------------------------------------------------------------------------
# Wrapper
# ---------------------------------------------------------------------------
def positional_encoding(x, pe_table, *, dropout_p=DROPOUT_P, training=False,
                        rng_key=None, tile_seq=1024):
    """x: [seq_len, batch, d_model] -> same shape (float output in x.dtype)."""
    S, B, D = x.shape
    BD = B * D
    x2 = x.reshape(S, BD)                          # lane-dense view (free reshape)
    pe = pe_table[:S].astype(jnp.float32)          # [S, D]

    # Tile must be a multiple of 8 (sublane) unless it covers the whole axis.
    ts = S if tile_seq >= S else (tile_seq // 8) * 8
    ts = max(ts, min(S, 8))
    grid = (pl.cdiv(S, ts),)

    x_spec = pl.BlockSpec((ts, BD), lambda i: (i, 0))
    pe_spec = pl.BlockSpec((ts, D), lambda i: (i, 0))
    out_spec = pl.BlockSpec((ts, BD), lambda i: (i, 0))
    params = pltpu.CompilerParams(dimension_semantics=("parallel",))
    out_shape = jax.ShapeDtypeStruct((S, BD), x.dtype)

    if (not training) or dropout_p == 0.0:
        # Eval path (nn.Dropout is identity in eval mode).
        out2 = pl.pallas_call(
            partial(_pe_add_kernel, batch=B),
            out_shape=out_shape,
            grid=grid,
            in_specs=[x_spec, pe_spec],
            out_specs=out_spec,
            compiler_params=params,
        )(x2, pe)
        return out2.reshape(S, B, D)

    # Training path: x + pe fused with inverted dropout.
    if rng_key is None:
        rng_key = jax.random.PRNGKey(0)
    bits = jax.random.bits(rng_key, (S, BD), dtype=jnp.uint32)
    noise = jax.lax.bitcast_convert_type(bits, jnp.int32)   # uniform over int32
    thr = int(round(float(dropout_p) * 4294967296.0)) - 2147483648
    thr = max(-2147483648, min(2147483647, thr))
    scale = 1.0 / (1.0 - float(dropout_p))
    noise_spec = pl.BlockSpec((ts, BD), lambda i: (i, 0))

    out2 = pl.pallas_call(
        partial(_pe_add_dropout_kernel, batch=B, threshold=thr, scale=scale),
        out_shape=out_shape,
        grid=grid,
        in_specs=[x_spec, pe_spec, noise_spec],
        out_specs=out_spec,
        compiler_params=params,
    )(x2, pe, noise)
    return out2.reshape(S, B, D)


# ---------------------------------------------------------------------------
if __name__ == "__main__":
    key = jax.random.PRNGKey(0)
    kx, kx2, kd = jax.random.split(key, 3)
    seq_len, batch = 8, 2
    x = jax.random.normal(kx, (seq_len, batch, D_MODEL), dtype=jnp.float32)

    pe_table = make_pe_table(D_MODEL, MAX_LEN)              # [5000, 64]

    # Eval-mode forward (deterministic; dropout is identity) — check vs reference.
    out = positional_encoding(x, pe_table, training=False)
    out = jax.block_until_ready(out)
    ref = x + pe_table[:seq_len][:, None, :]
    assert out.shape == (seq_len, batch, D_MODEL)
    assert jnp.allclose(out, ref, atol=1e-6, rtol=1e-6)

    # Multi-tile path with a ragged tail (S=20, tile=8) — still exact.
    s2 = 20
    xb = jax.random.normal(kx2, (s2, batch, D_MODEL), dtype=jnp.float32)
    outb = jax.block_until_ready(
        positional_encoding(xb, pe_table, training=False, tile_seq=8))
    refb = xb + pe_table[:s2][:, None, :]
    assert jnp.allclose(outb, refb, atol=1e-6, rtol=1e-6)

    # Training-mode forward (fused inverted dropout). Each element must be
    # either exactly 0 (dropped) or the reference value scaled by 1/(1-p).
    out_train = positional_encoding(x, pe_table, training=True, rng_key=kd)
    out_train = jax.block_until_ready(out_train)
    assert out_train.shape == (seq_len, batch, D_MODEL)
    scaled = ref / (1.0 - DROPOUT_P)
    ok = jnp.isclose(out_train, 0.0) | jnp.isclose(out_train, scaled,
                                                   atol=1e-5, rtol=1e-5)
    assert bool(jnp.all(ok))

    print("KERNEL_OK")
</pallas_src>

<mosaic_0001>
module attributes {stable_mosaic.version = 11 : i64} {
  func.func @_pe_add_kernel(%arg0: i32, %arg1: memref<8x128xf32, #tpu.memory_space<vmem>>, %arg2: memref<8x64xf32, #tpu.memory_space<vmem>>, %arg3: memref<8x128xf32, #tpu.memory_space<vmem>>) attributes {dimension_semantics = [#tpu.dimension_semantics<parallel>], iteration_bounds = array<i64: 1>, scalar_prefetch = 0 : i64, scratch_operands = 0 : i64, tpu.core_type = #tpu.core_type<tc>, window_params = [{transform_indices = @transform_0, window_bounds = array<i64: 8, 128>}, {transform_indices = @transform_1, window_bounds = array<i64: 8, 64>}, {transform_indices = @transform_2, window_bounds = array<i64: 8, 128>}]} {
    %c0 = arith.constant 0 : index
    %c0_0 = arith.constant 0 : index
    %0 = vector.load %arg2[%c0, %c0_0] : memref<8x64xf32, #tpu.memory_space<vmem>>, vector<8x64xf32>
    %1 = tpu.concatenate %0, %0 in 1 : vector<8x64xf32>, vector<8x64xf32> -> vector<8x128xf32>
    %c0_1 = arith.constant 0 : index
    %c0_2 = arith.constant 0 : index
    %2 = vector.load %arg1[%c0_1, %c0_2] : memref<8x128xf32, #tpu.memory_space<vmem>>, vector<8x128xf32>
    %3 = arith.addf %2, %1 : vector<8x128xf32>
    %c0_3 = arith.constant 0 : index
    %c0_4 = arith.constant 0 : index
    %4 = vector.load %arg3[%c0_3, %c0_4] : memref<8x128xf32, #tpu.memory_space<vmem>>, vector<8x128xf32>
    tpu.vector_store %arg3[%c0_3, %c0_4], %3 {strides = array<i32>} : memref<8x128xf32, #tpu.memory_space<vmem>>, vector<8x128xf32>,
    return
  }
  func.func @transform_0(%arg0: i32) -> (i32, i32) {
    %c0_i32 = arith.constant 0 : i32
    %c0_i32_0 = arith.constant 0 : i32
    return %arg0, %c0_i32 : i32, i32
  }
  func.func @transform_1(%arg0: i32) -> (i32, i32) {
    %c0_i32 = arith.constant 0 : i32
    %c0_i32_0 = arith.constant 0 : i32
    return %arg0, %c0_i32 : i32, i32
  }
  func.func @transform_2(%arg0: i32) -> (i32, i32) {
    %c0_i32 = arith.constant 0 : i32
    %c0_i32_0 = arith.constant 0 : i32
    return %arg0, %c0_i32 : i32, i32
  }
}

</mosaic_0001>

<bundles_post_ra>
// kernel: tpu_custom_call.1
= control target key start
LH: loop header
LB: loop body
LE: loop exit
PB: predicated region body
PF: predicated region fallthrough
CT: control target
= control target key end

     0   :  { %7 = vsyncpa [#allocation3], 0  ;;  %s160_s0 = inlined_call_operand.hbm [shape: f32[8,128], index: 0, kind: input, shape index: {}]   ;;  %s161_s1 = inlined_call_operand.hbm [shape: f32[8,64], index: 1, kind: input, shape index: {}]   ;;  %s162_s2 = inlined_call_operand.hbm [shape: f32[8,128], index: 2, kind: output, shape index: {}]  }
   0x1   :  { %8 = vsyncpa [#allocation6], 0 }
   0x2   :  { %9 = vsyncpa [#allocation4], 0  ;;  %s132_s9 = smov [#allocation2]   ;;  %s133_s11 = smov [#allocation5]  }
   0x3   :  { %s16_s10 = sshll.u32 %s132_s9, 4  ;;  %s26_s12 = sshll.u32 %s133_s11, 4  ;;  %s17_s10 = int_to_ptr.vmem [resolvable:$true] %s16_s10  ;;  %s27_s12 = int_to_ptr.vmem [resolvable:$true] %s26_s12 }
   0x4   :  { %s74_s13 = scalar_lea.vmem %s17_s10, 128  ;;  %p79_p1 = scmp.lt.s32.totalorder %s17_s10, %s17_s10 }
   0x5   :  { %p75_p0 = scmp.ne.s32.totalorder %s17_s10, %s74_s13  ;;  %p80_p2 = scmp.lt.s32.totalorder %s74_s13, %s74_s13 }
   0x7   :  { %p81_p3 = por %p80_p2, %p79_p1 }
   0x9   :  { %p82_p4 = pnand %p81_p3, %p75_p0 }
   0xb   :  { %85 = shalt.err (!%p82_p4)
}
   0xc   :  { %19 = dma.hbm_to_vmem [thread:$0]  %s160_s0, 128, %s17_s10, [#allocation3]  }
   0xd   :  { %s94_s16 = scalar_lea.vmem %s27_s12, 128  ;;  %p99_p6 = scmp.lt.s32.totalorder %s27_s12, %s27_s12 }
   0xe   :  { %p95_p5 = scmp.ne.s32.totalorder %s27_s12, %s94_s16  ;;  %p100_p7 = scmp.lt.s32.totalorder %s94_s16, %s94_s16 }
  0x10   :  { %p101_p8 = por %p100_p7, %p99_p6 }
  0x12   :  { %p102_p9 = pnand %p101_p8, %p95_p5 }
  0x14   :  { %105 = shalt.err (!%p102_p9)
}
  0x15   :  { %29 = dma.hbm_to_vmem [thread:$0]  %s161_s1, 128, %s27_s12, [#allocation6]  }
  0x16   :  { %126 = dma.done.wait [#allocation3], 128  }
  0x17   :  { %127 = vsyncadd [#allocation3], 4294967168 }
  0x18   :  { %128 = dma.done.wait [#allocation6], 128  }
  0x19   :  { %129 = vsyncadd [#allocation6], 4294967168  ;;  %v36_v0 = vld [vmem:[#allocation5] sm:$0xff]  ;;  %s134_s19 = smov 64   ;;  %vm41_vm0 = vcmask 523264   ;;  %v43_v1 = vld [vmem:[#allocation2] sm:$0xff] }
  0x1a   :  { %38 = vrot.lane.b32.xlu0 %v36_v0, %s134_s19  ;;  %s135_s0 = smov [#allocation7]  }
  0x1b   :  { %s52_s20 = sshll.u32 %s135_s0, 4  ;;  %s53_s20 = int_to_ptr.vmem [resolvable:$true] %s52_s20 }
  0x1c   :  { %s106_s21 = scalar_lea.vmem %s53_s20, 128  ;;  %p111_p11 = scmp.lt.s32.totalorder %s53_s20, %s53_s20 }
  0x1d   :  { %p107_p10 = scmp.ne.s32.totalorder %s53_s20, %s106_s21  ;;  %p112_p12 = scmp.lt.s32.totalorder %s106_s21, %s106_s21 }
  0x1f   :  { %p113_p13 = por %p112_p12, %p111_p11 }
  0x21   :  { %p114_p0 = pnand %p113_p13, %p107_p10 }
  0x8c   :  { %v39_v2 = vpop.permute.xlu0 %38 }
  0x8d   :  { %v42_v3 = vsel %vm41_vm0, %v36_v0, %v39_v2 }
  0x8e   :  { %v44_v4 = vadd.f32 %v43_v1, %v42_v3 }
  0x90   :  { %45 = vst [vmem:[#allocation7] sm:$0xff] %v44_v4 }
  0x91   :  { %117 = shalt.err (!%p114_p0)
}
  0x92   :  { %55 = dma.vmem_to_hbm [thread:$0]  %s53_s20, 128, %s162_s2, [#allocation4]  }
  0x93   :  { %130 = dma.done.wait [#allocation4], 128  }
  0x94   :  { %131 = vsyncadd [#allocation4], 4294967168 }
  0x95   :  { %59 = vsyncpa [#allocation3], 1 }
  0x96   :  { %60 = vsyncpa [#allocation6], 1 }
  0x97   :  { %61 = vsyncpa [#allocation4], 1 }

</bundles_post_ra>
